<compile_context>
chip_gen: v7x
topology: tpu7x:2x2x1
jax: 0.10.0
libtpu: 0.0.40
codegen_flags: <defaults>
</compile_context>

<pallas_src>
import functools

import jax
import jax.numpy as jnp
from jax.experimental import pallas as pl
from jax.experimental.pallas import tpu as pltpu


_TL_MAX = 16 * 1024  # lanes per grid step: (8, 16384) f32 block = 512 KiB


def _loss_con1_kernel(*refs, n_pp, n_pn, n_p, n_n, static_lamb):
    # refs = ([lamb_smem], x, out, 9 x (8,1) VMEM accumulators)
    if static_lamb is None:
        lamb_ref = refs[0]
        refs = refs[1:]
    else:
        lamb_ref = None
    x_ref, out_ref = refs[0], refs[1]
    acc_refs = refs[2:]          # nine (8, 1) f32 accumulators

    step = pl.program_id(0)
    last = pl.num_programs(0) - 1

    # ----- batched moment computation for this lane tile -----------------
    # Row layout: 0:sp 1:gp 2:yp 3:y_pred_pos 4:sn 5:gn 6:yn 7:y_pred_neg
    x = x_ref[...]                                          # one load of the tile
    shape = x.shape
    pos = jax.lax.broadcasted_iota(jnp.int32, shape, 0) < 4
    Y = jnp.where(pos, jnp.broadcast_to(x[2:3, :], shape),
                  jnp.broadcast_to(x[6:7, :], shape))       # yp on pos rows, yn on neg
    G = jnp.where(pos, jnp.broadcast_to(x[1:2, :], shape),
                  jnp.broadcast_to(x[5:6, :], shape))       # gp on pos rows, gn on neg

    xx = x * x
    xy = x * Y
    xyy = xy * Y
    xg = x * G
    xgy = xg * Y
    slabs = (x, xx, xy, xyy, xx * Y, xy * xy, xg, xgy, xgy * Y)

    @pl.when(step == 0)
    def _():
        for a in acc_refs:
            a[...] = jnp.zeros_like(a)

    for a, s in zip(acc_refs, slabs):
        a[...] += jnp.sum(s, axis=-1, keepdims=True)        # (8, 1) partial sums

    # ----- finalize: combine the 38 scalar moments --------------------------
    @pl.when(step == last)
    def _():
        r_x, r_xx, r_xy, r_xyy, r_xxy, r_xxyy, r_xg, r_xgy, r_xgyy = (
            a[...] for a in acc_refs)

        def E(m, r):                    # (1, 1) moment from sublane r
            return m[r:r + 1, :]

        # -------- single_loss(y_pred_pos, y_pred_neg) --------
        pp, pn = float(n_pp), float(n_pn)
        sv, su = E(r_x, 3), E(r_x, 7)          # sum pred_pos, sum pred_neg
        sv2, su2 = E(r_xx, 3), E(r_xx, 7)
        sum_obj = (pp * pn + 2.0 * pp * su - 2.0 * pn * sv
                   + pp * su2 - 2.0 * su * sv + pn * sv2)
        obj = sum_obj * (1.0 / (pp * pn))

        # ----------------------- corr -------------------------
        Pf, Qf = float(n_p), float(n_n)
        Msp, Mgp, Myp = E(r_x, 0), E(r_x, 1), E(r_x, 2)
        Nsn, Ngn, Nyn = E(r_x, 4), E(r_x, 5), E(r_x, 6)
        Msp2, Mgp2, Myp2 = E(r_xx, 0), E(r_xx, 1), E(r_xx, 2)
        Nsn2, Ngn2, Nyn2 = E(r_xx, 4), E(r_xx, 5), E(r_xx, 6)
        Mspyp, Mgpyp = E(r_xy, 0), E(r_xy, 1)
        Nsnyn, Ngnyn = E(r_xy, 4), E(r_xy, 5)
        Mspyp2, Mgpyp2 = E(r_xyy, 0), E(r_xyy, 1)
        Nsnyn2, Ngnyn2 = E(r_xyy, 4), E(r_xyy, 5)
        Msp2yp, Mgp2yp = E(r_xxy, 0), E(r_xxy, 1)
        Nsn2yn, Ngn2yn = E(r_xxy, 4), E(r_xxy, 5)
        Msp2yp2, Mgp2yp2 = E(r_xxyy, 0), E(r_xxyy, 1)
        Nsn2yn2, Ngn2yn2 = E(r_xxyy, 4), E(r_xxyy, 5)
        Mspgp, Nsngn = E(r_xg, 0), E(r_xg, 4)
        Mspgpyp, Nsngnyn = E(r_xgy, 0), E(r_xgy, 4)
        Mspgpyp2, Nsngnyn2 = E(r_xgyy, 0), E(r_xgyy, 4)

        sum_a = Qf * Mspyp - Msp * Nyn - Myp * Nsn + Pf * Nsnyn
        sum_b = Qf * Mgpyp - Mgp * Nyn - Myp * Ngn + Pf * Ngnyn
        sum_a2 = (Qf * Msp2yp2 - 2.0 * Msp2yp * Nyn + Msp2 * Nyn2
                  - 2.0 * Mspyp2 * Nsn + 4.0 * Mspyp * Nsnyn - 2.0 * Msp * Nsnyn2
                  + Myp2 * Nsn2 - 2.0 * Myp * Nsn2yn + Pf * Nsn2yn2)
        sum_b2 = (Qf * Mgp2yp2 - 2.0 * Mgp2yp * Nyn + Mgp2 * Nyn2
                  - 2.0 * Mgpyp2 * Ngn + 4.0 * Mgpyp * Ngnyn - 2.0 * Mgp * Ngnyn2
                  + Myp2 * Ngn2 - 2.0 * Myp * Ngn2yn + Pf * Ngn2yn2)
        sum_ab = (Qf * Mspgpyp2 - 2.0 * Mspgpyp * Nyn + Mspgp * Nyn2
                  - Mspyp2 * Ngn + 2.0 * Mspyp * Ngnyn - Msp * Ngnyn2
                  - Mgpyp2 * Nsn + 2.0 * Mgpyp * Nsnyn - Mgp * Nsnyn2
                  + Myp2 * Nsngn - 2.0 * Myp * Nsngnyn + Pf * Nsngnyn2)

        nm = Pf * Qf                    # distinct entries of the small matrix
        big_n = nm * nm                 # elements of the torch (N*M, N*M) matrix
        inv_nm = 1.0 / nm
        # torch.std is unbiased over big_n elements; each distinct value
        # appears nm times: var = nm*(sum x^2 - (sum x)^2/nm)/(big_n - 1).
        var_scale = nm / (big_n - 1.0) if big_n > 1.0 else float("nan")

        mean_a = sum_a * inv_nm
        mean_b = sum_b * inv_nm
        mean_ab = sum_ab * inv_nm
        var_a = jnp.maximum(var_scale * (sum_a2 - sum_a * sum_a * inv_nm), 0.0)
        var_b = jnp.maximum(var_scale * (sum_b2 - sum_b * sum_b * inv_nm), 0.0)

        cor = (mean_ab - mean_a * mean_b) * jax.lax.rsqrt(var_a * var_b)
        cor = jnp.where(jnp.isnan(cor), jnp.zeros_like(cor), cor)
        # TODO(synk): torch code does `print(cor)` as a side effect; omitted.

        lamb_val = static_lamb if static_lamb is not None else lamb_ref[0, 0]
        out_ref[...] = obj + lamb_val * jnp.abs(cor)


def loss_con1_forward(y_pred_pos, y_pred_neg, s_pos, s_neg,
                      y_pos, y_neg, g_pos, g_neg, lamb):
    f32 = jnp.float32
    vpp = jnp.asarray(y_pred_pos, f32).reshape(-1)
    vpn = jnp.asarray(y_pred_neg, f32).reshape(-1)
    sp = jnp.asarray(s_pos, f32).reshape(-1)
    sn = jnp.asarray(s_neg, f32).reshape(-1)
    yp = jnp.asarray(y_pos, f32).reshape(-1)
    yn = jnp.asarray(y_neg, f32).reshape(-1)
    gp = jnp.asarray(g_pos, f32).reshape(-1)
    gn = jnp.asarray(g_neg, f32).reshape(-1)

    n_pp, n_pn = int(vpp.shape[0]), int(vpn.shape[0])
    n_p, n_n = int(sp.shape[0]), int(sn.shape[0])

    # Shared-shift centering: difference matrices are exactly invariant to a
    # common shift of each (pos, neg) pair, but the single-pass degree-4
    # moments lose far less precision on centered data.
    c = jnp.mean(sp);  sp = sp - c;   sn = sn - c
    c = jnp.mean(gp);  gp = gp - c;   gn = gn - c
    c = jnp.mean(yp);  yp = yp - c;   yn = yn - c
    c = jnp.mean(vpp); vpp = vpp - c; vpn = vpn - c

    rows = (sp, gp, yp, vpp, sn, gn, yn, vpn)
    max_len = max(n_pp, n_pn, n_p, n_n)
    l_aligned = max(128, -(-max_len // 128) * 128)
    tl = min(_TL_MAX, l_aligned)
    l_pad = -(-l_aligned // tl) * tl
    n_steps = l_pad // tl

    # One zeros init + 8 static dynamic_update_slices -> a single packing
    # fusion; zero padding is inert for every moment the kernel uses.
    slab = jnp.zeros((8, l_pad), f32)
    for r, v in enumerate(rows):
        slab = jax.lax.dynamic_update_slice(slab, v[None, :], (r, 0))

    static_lamb = float(lamb) if isinstance(lamb, (int, float)) else None
    kernel = functools.partial(_loss_con1_kernel, n_pp=n_pp, n_pn=n_pn,
                               n_p=n_p, n_n=n_n, static_lamb=static_lamb)

    x_spec = pl.BlockSpec((8, tl), lambda i: (0, i))
    if static_lamb is None:
        in_specs = [pl.BlockSpec(memory_space=pltpu.MemorySpace.SMEM), x_spec]
        args = (jnp.asarray(lamb, f32).reshape(1, 1), slab)
    else:
        in_specs = [x_spec]
        args = (slab,)

    out = pl.pallas_call(
        kernel,
        out_shape=jax.ShapeDtypeStruct((1, 1), f32),
        grid=(n_steps,),
        in_specs=in_specs,
        out_specs=pl.BlockSpec((1, 1), lambda i: (0, 0)),
        scratch_shapes=[pltpu.VMEM((8, 1), jnp.float32)] * 9,
        compiler_params=pltpu.CompilerParams(
            dimension_semantics=("arbitrary",),
            vmem_limit_bytes=32 * 1024 * 1024),
    )(*args)
    return out[0, 0]


# ------------- pure-JAX literal reference (exact torch semantics) ----------
def _ref_loss(ypp, ypn, sp, sn, yp, yn, gp, gn, lamb):
    def dm(x, y):
        x = x.reshape(-1, 1).astype(jnp.float32)
        y = y.reshape(-1, 1).astype(jnp.float32)
        x_m = jnp.transpose(jnp.tile(x, (y.shape[0], 1)))   # (1, N*M)
        y_m = jnp.tile(y, (x.shape[0], 1))                  # (N*M, 1)
        return x_m - y_m                                    # (N*M, N*M)

    diff = dm(ypn, ypp)
    obj = jnp.mean((1.0 + diff) ** 2)
    s_m, g_m, y_m = dm(sp, sn), dm(gp, gn), dm(yp, yn)
    a = s_m * y_m
    b = g_m * y_m
    cor = ((jnp.mean(a * b) - jnp.mean(a) * jnp.mean(b))
           / jnp.std(a, ddof=1) / jnp.std(b, ddof=1))
    cor = jnp.where(jnp.isnan(cor), 0.0, cor)
    return obj + lamb * jnp.abs(cor)


# --- factorized reference (for sizes where the literal matrices can't fit) --
def _ref_loss_factored(ypp, ypn, sp, sn, yp, yn, gp, gn, lamb):
    f32 = jnp.float32
    ypp, ypn, sp, sn, yp, yn, gp, gn = (
        jnp.asarray(v, f32).reshape(-1) for v in (ypp, ypn, sp, sn, yp, yn, gp, gn))
    m = jnp.mean
    obj = (1.0 + m(ypn * ypn) + m(ypp * ypp) + 2.0 * m(ypn) - 2.0 * m(ypp)
           - 2.0 * m(ypn) * m(ypp))
    Ea = m(sp * yp) - m(sp) * m(yn) - m(yp) * m(sn) + m(sn * yn)
    Eb = m(gp * yp) - m(gp) * m(yn) - m(yp) * m(gn) + m(gn * yn)
    Ea2 = (m(sp * sp * yp * yp) - 2.0 * m(sp * sp * yp) * m(yn)
           + m(sp * sp) * m(yn * yn)
           - 2.0 * m(sp * yp * yp) * m(sn) + 4.0 * m(sp * yp) * m(sn * yn)
           - 2.0 * m(sp) * m(sn * yn * yn)
           + m(yp * yp) * m(sn * sn) - 2.0 * m(yp) * m(sn * sn * yn)
           + m(sn * sn * yn * yn))
    Eb2 = (m(gp * gp * yp * yp) - 2.0 * m(gp * gp * yp) * m(yn)
           + m(gp * gp) * m(yn * yn)
           - 2.0 * m(gp * yp * yp) * m(gn) + 4.0 * m(gp * yp) * m(gn * yn)
           - 2.0 * m(gp) * m(gn * yn * yn)
           + m(yp * yp) * m(gn * gn) - 2.0 * m(yp) * m(gn * gn * yn)
           + m(gn * gn * yn * yn))
    Eab = (m(sp * gp * yp * yp) - 2.0 * m(sp * gp * yp) * m(yn)
           + m(sp * gp) * m(yn * yn)
           - m(sp * yp * yp) * m(gn) + 2.0 * m(sp * yp) * m(gn * yn)
           - m(sp) * m(gn * yn * yn)
           - m(gp * yp * yp) * m(sn) + 2.0 * m(gp * yp) * m(sn * yn)
           - m(gp) * m(sn * yn * yn)
           + m(yp * yp) * m(sn * gn) - 2.0 * m(yp) * m(sn * gn * yn)
           + m(sn * gn * yn * yn))
    big_n = (float(sp.shape[0]) * float(sn.shape[0])) ** 2
    var_a = big_n * (Ea2 - Ea * Ea) / (big_n - 1.0)
    var_b = big_n * (Eb2 - Eb * Eb) / (big_n - 1.0)
    cor = (Eab - Ea * Eb) / jnp.sqrt(var_a) / jnp.sqrt(var_b)
    cor = jnp.where(jnp.isnan(cor), 0.0, cor)
    return obj + lamb * jnp.abs(cor)


if __name__ == "__main__":
    lamb = 0.5

    # --- small case: checked against the literal torch-style reference ---
    ks = jax.random.split(jax.random.PRNGKey(0), 8)
    n_pos, n_neg = 8, 6
    small = [jax.random.normal(ks[i], (n_pos if i % 2 == 0 else n_neg,),
                               jnp.float32) for i in range(8)]
    loss = loss_con1_forward(*small, lamb)
    jax.block_until_ready(loss)
    ref = _ref_loss(*small, lamb)
    assert jnp.allclose(loss, ref, rtol=1e-4, atol=1e-4), (loss, ref)

    # --- larger case: exercises the multi-step lane grid + accumulators ---
    kl = jax.random.split(jax.random.PRNGKey(1), 8)
    n_pos, n_neg = 20000, 17000
    big = [jax.random.normal(kl[i], (n_pos if i % 2 == 0 else n_neg,),
                             jnp.float32) for i in range(8)]
    loss_big = loss_con1_forward(*big, lamb)
    jax.block_until_ready(loss_big)
    ref_big = _ref_loss_factored(*big, lamb)
    assert jnp.allclose(loss_big, ref_big, rtol=1e-3, atol=2e-3), (loss_big, ref_big)

    print("KERNEL_OK")
</pallas_src>

<mosaic_0001>
module attributes {stable_mosaic.version = 11 : i64} {
  func.func @_loss_con1_kernel(%arg0: i32, %arg1: memref<8x128xf32, #tpu.memory_space<vmem>>, %arg2: memref<1x1xf32, #tpu.memory_space<vmem>>, %arg3: memref<8x1xf32, #tpu.memory_space<vmem>>, %arg4: memref<8x1xf32, #tpu.memory_space<vmem>>, %arg5: memref<8x1xf32, #tpu.memory_space<vmem>>, %arg6: memref<8x1xf32, #tpu.memory_space<vmem>>, %arg7: memref<8x1xf32, #tpu.memory_space<vmem>>, %arg8: memref<8x1xf32, #tpu.memory_space<vmem>>, %arg9: memref<8x1xf32, #tpu.memory_space<vmem>>, %arg10: memref<8x1xf32, #tpu.memory_space<vmem>>, %arg11: memref<8x1xf32, #tpu.memory_space<vmem>>) attributes {dimension_semantics = [#tpu.dimension_semantics<arbitrary>], iteration_bounds = array<i64: 1>, scalar_prefetch = 0 : i64, scratch_operands = 9 : i64, tpu.core_type = #tpu.core_type<tc>, window_params = [{transform_indices = @transform_0, window_bounds = array<i64: 8, 128>}, {pipeline_mode = #tpu.pipeline_mode<synchronous>, transform_indices = @transform_1, window_bounds = array<i64: 1, 1>}]} {
    %c0 = arith.constant 0 : index
    %c0_0 = arith.constant 0 : index
    %0 = vector.load %arg1[%c0, %c0_0] : memref<8x128xf32, #tpu.memory_space<vmem>>, vector<8x128xf32>
    %1 = tpu.iota {dimensions = array<i32: 0>} : vector<8x128xi32>
    %c4_i32 = arith.constant 4 : i32
    %2 = vector.broadcast %c4_i32 : i32 to vector<8x128xi32>
    %3 = arith.cmpi slt, %1, %2 : vector<8x128xi32>
    %4 = vector.extract_strided_slice %0 {offsets = [2, 0], sizes = [1, 128], strides = [1, 1]} : vector<8x128xf32> to vector<1x128xf32>
    %5 = vector.shape_cast %4 : vector<1x128xf32> to vector<1x128xf32>
    %6 = vector.broadcast %5 : vector<1x128xf32> to vector<8x128xf32>
    %7 = vector.extract_strided_slice %0 {offsets = [6, 0], sizes = [1, 128], strides = [1, 1]} : vector<8x128xf32> to vector<1x128xf32>
    %8 = vector.shape_cast %7 : vector<1x128xf32> to vector<1x128xf32>
    %9 = vector.broadcast %8 : vector<1x128xf32> to vector<8x128xf32>
    %10 = arith.select %3, %6, %9 : vector<8x128xi1>, vector<8x128xf32>
    %11 = vector.extract_strided_slice %0 {offsets = [1, 0], sizes = [1, 128], strides = [1, 1]} : vector<8x128xf32> to vector<1x128xf32>
    %12 = vector.shape_cast %11 : vector<1x128xf32> to vector<1x128xf32>
    %13 = vector.broadcast %12 : vector<1x128xf32> to vector<8x128xf32>
    %14 = vector.extract_strided_slice %0 {offsets = [5, 0], sizes = [1, 128], strides = [1, 1]} : vector<8x128xf32> to vector<1x128xf32>
    %15 = vector.shape_cast %14 : vector<1x128xf32> to vector<1x128xf32>
    %16 = vector.broadcast %15 : vector<1x128xf32> to vector<8x128xf32>
    %17 = arith.select %3, %13, %16 : vector<8x128xi1>, vector<8x128xf32>
    %18 = arith.mulf %0, %0 : vector<8x128xf32>
    %19 = arith.mulf %0, %10 : vector<8x128xf32>
    %20 = arith.mulf %19, %10 : vector<8x128xf32>
    %21 = arith.mulf %0, %17 : vector<8x128xf32>
    %22 = arith.mulf %21, %10 : vector<8x128xf32>
    %23 = arith.mulf %18, %10 : vector<8x128xf32>
    %24 = arith.mulf %19, %19 : vector<8x128xf32>
    %25 = arith.mulf %22, %10 : vector<8x128xf32>
    %c0_i32 = arith.constant 0 : i32
    %26 = arith.cmpi eq, %arg0, %c0_i32 : i32
    %27 = arith.extui %26 : i1 to i32
    %c0_i32_1 = arith.constant 0 : i32
    %28 = arith.cmpi ne, %27, %c0_i32_1 : i32
    scf.if %28 {
      %cst_48 = arith.constant 0.000000e+00 : f32
      %77 = vector.broadcast %cst_48 : f32 to vector<8x1xf32>
      %c0_49 = arith.constant 0 : index
      %c0_50 = arith.constant 0 : index
      %78 = vector.load %arg3[%c0_49, %c0_50] : memref<8x1xf32, #tpu.memory_space<vmem>>, vector<8x1xf32>
      tpu.vector_store %arg3[%c0_49, %c0_50], %77 {strides = array<i32>} : memref<8x1xf32, #tpu.memory_space<vmem>>, vector<8x1xf32>,
      %cst_51 = arith.constant 0.000000e+00 : f32
      %79 = vector.broadcast %cst_51 : f32 to vector<8x1xf32>
      %c0_52 = arith.constant 0 : index
      %c0_53 = arith.constant 0 : index
      %80 = vector.load %arg4[%c0_52, %c0_53] : memref<8x1xf32, #tpu.memory_space<vmem>>, vector<8x1xf32>
      tpu.vector_store %arg4[%c0_52, %c0_53], %79 {strides = array<i32>} : memref<8x1xf32, #tpu.memory_space<vmem>>, vector<8x1xf32>,
      %cst_54 = arith.constant 0.000000e+00 : f32
      %81 = vector.broadcast %cst_54 : f32 to vector<8x1xf32>
      %c0_55 = arith.constant 0 : index
      %c0_56 = arith.constant 0 : index
      %82 = vector.load %arg5[%c0_55, %c0_56] : memref<8x1xf32, #tpu.memory_space<vmem>>, vector<8x1xf32>
      tpu.vector_store %arg5[%c0_55, %c0_56], %81 {strides = array<i32>} : memref<8x1xf32, #tpu.memory_space<vmem>>, vector<8x1xf32>,
      %cst_57 = arith.constant 0.000000e+00 : f32
      %83 = vector.broadcast %cst_57 : f32 to vector<8x1xf32>
      %c0_58 = arith.constant 0 : index
      %c0_59 = arith.constant 0 : index
      %84 = vector.load %arg6[%c0_58, %c0_59] : memref<8x1xf32, #tpu.memory_space<vmem>>, vector<8x1xf32>
      tpu.vector_store %arg6[%c0_58, %c0_59], %83 {strides = array<i32>} : memref<8x1xf32, #tpu.memory_space<vmem>>, vector<8x1xf32>,
      %cst_60 = arith.constant 0.000000e+00 : f32
      %85 = vector.broadcast %cst_60 : f32 to vector<8x1xf32>
      %c0_61 = arith.constant 0 : index
      %c0_62 = arith.constant 0 : index
      %86 = vector.load %arg7[%c0_61, %c0_62] : memref<8x1xf32, #tpu.memory_space<vmem>>, vector<8x1xf32>
      tpu.vector_store %arg7[%c0_61, %c0_62], %85 {strides = array<i32>} : memref<8x1xf32, #tpu.memory_space<vmem>>, vector<8x1xf32>,
      %cst_63 = arith.constant 0.000000e+00 : f32
      %87 = vector.broadcast %cst_63 : f32 to vector<8x1xf32>
      %c0_64 = arith.constant 0 : index
      %c0_65 = arith.constant 0 : index
      %88 = vector.load %arg8[%c0_64, %c0_65] : memref<8x1xf32, #tpu.memory_space<vmem>>, vector<8x1xf32>
      tpu.vector_store %arg8[%c0_64, %c0_65], %87 {strides = array<i32>} : memref<8x1xf32, #tpu.memory_space<vmem>>, vector<8x1xf32>,
      %cst_66 = arith.constant 0.000000e+00 : f32
      %89 = vector.broadcast %cst_66 : f32 to vector<8x1xf32>
      %c0_67 = arith.constant 0 : index
      %c0_68 = arith.constant 0 : index
      %90 = vector.load %arg9[%c0_67, %c0_68] : memref<8x1xf32, #tpu.memory_space<vmem>>, vector<8x1xf32>
      tpu.vector_store %arg9[%c0_67, %c0_68], %89 {strides = array<i32>} : memref<8x1xf32, #tpu.memory_space<vmem>>, vector<8x1xf32>,
      %cst_69 = arith.constant 0.000000e+00 : f32
      %91 = vector.broadcast %cst_69 : f32 to vector<8x1xf32>
      %c0_70 = arith.constant 0 : index
      %c0_71 = arith.constant 0 : index
      %92 = vector.load %arg10[%c0_70, %c0_71] : memref<8x1xf32, #tpu.memory_space<vmem>>, vector<8x1xf32>
      tpu.vector_store %arg10[%c0_70, %c0_71], %91 {strides = array<i32>} : memref<8x1xf32, #tpu.memory_space<vmem>>, vector<8x1xf32>,
      %cst_72 = arith.constant 0.000000e+00 : f32
      %93 = vector.broadcast %cst_72 : f32 to vector<8x1xf32>
      %c0_73 = arith.constant 0 : index
      %c0_74 = arith.constant 0 : index
      %94 = vector.load %arg11[%c0_73, %c0_74] : memref<8x1xf32, #tpu.memory_space<vmem>>, vector<8x1xf32>
      tpu.vector_store %arg11[%c0_73, %c0_74], %93 {strides = array<i32>} : memref<8x1xf32, #tpu.memory_space<vmem>>, vector<8x1xf32>,
    } else {
    }
    %c0_2 = arith.constant 0 : index
    %c0_3 = arith.constant 0 : index
    %29 = vector.load %arg3[%c0_2, %c0_3] : memref<8x1xf32, #tpu.memory_space<vmem>>, vector<8x1xf32>
    %cst = arith.constant dense<0.000000e+00> : vector<8xf32>
    %30 = vector.multi_reduction <add>, %0, %cst [1] : vector<8x128xf32> to vector<8xf32>
    %31 = vector.shape_cast %30 : vector<8xf32> to vector<8x1xf32>
    %32 = arith.addf %29, %31 : vector<8x1xf32>
    %c0_4 = arith.constant 0 : index
    %c0_5 = arith.constant 0 : index
    %33 = vector.load %arg3[%c0_4, %c0_5] : memref<8x1xf32, #tpu.memory_space<vmem>>, vector<8x1xf32>
    tpu.vector_store %arg3[%c0_4, %c0_5], %32 {strides = array<i32>} : memref<8x1xf32, #tpu.memory_space<vmem>>, vector<8x1xf32>,
    %c0_6 = arith.constant 0 : index
    %c0_7 = arith.constant 0 : index
    %34 = vector.load %arg4[%c0_6, %c0_7] : memref<8x1xf32, #tpu.memory_space<vmem>>, vector<8x1xf32>
    %cst_8 = arith.constant dense<0.000000e+00> : vector<8xf32>
    %35 = vector.multi_reduction <add>, %18, %cst_8 [1] : vector<8x128xf32> to vector<8xf32>
    %36 = vector.shape_cast %35 : vector<8xf32> to vector<8x1xf32>
    %37 = arith.addf %34, %36 : vector<8x1xf32>
    %c0_9 = arith.constant 0 : index
    %c0_10 = arith.constant 0 : index
    %38 = vector.load %arg4[%c0_9, %c0_10] : memref<8x1xf32, #tpu.memory_space<vmem>>, vector<8x1xf32>
    tpu.vector_store %arg4[%c0_9, %c0_10], %37 {strides = array<i32>} : memref<8x1xf32, #tpu.memory_space<vmem>>, vector<8x1xf32>,
    %c0_11 = arith.constant 0 : index
    %c0_12 = arith.constant 0 : index
    %39 = vector.load %arg5[%c0_11, %c0_12] : memref<8x1xf32, #tpu.memory_space<vmem>>, vector<8x1xf32>
    %cst_13 = arith.constant dense<0.000000e+00> : vector<8xf32>
    %40 = vector.multi_reduction <add>, %19, %cst_13 [1] : vector<8x128xf32> to vector<8xf32>
    %41 = vector.shape_cast %40 : vector<8xf32> to vector<8x1xf32>
    %42 = arith.addf %39, %41 : vector<8x1xf32>
    %c0_14 = arith.constant 0 : index
    %c0_15 = arith.constant 0 : index
    %43 = vector.load %arg5[%c0_14, %c0_15] : memref<8x1xf32, #tpu.memory_space<vmem>>, vector<8x1xf32>
    tpu.vector_store %arg5[%c0_14, %c0_15], %42 {strides = array<i32>} : memref<8x1xf32, #tpu.memory_space<vmem>>, vector<8x1xf32>,
    %c0_16 = arith.constant 0 : index
    %c0_17 = arith.constant 0 : index
    %44 = vector.load %arg6[%c0_16, %c0_17] : memref<8x1xf32, #tpu.memory_space<vmem>>, vector<8x1xf32>
    %cst_18 = arith.constant dense<0.000000e+00> : vector<8xf32>
    %45 = vector.multi_reduction <add>, %20, %cst_18 [1] : vector<8x128xf32> to vector<8xf32>
    %46 = vector.shape_cast %45 : vector<8xf32> to vector<8x1xf32>
    %47 = arith.addf %44, %46 : vector<8x1xf32>
    %c0_19 = arith.constant 0 : index
    %c0_20 = arith.constant 0 : index
    %48 = vector.load %arg6[%c0_19, %c0_20] : memref<8x1xf32, #tpu.memory_space<vmem>>, vector<8x1xf32>
    tpu.vector_store %arg6[%c0_19, %c0_20], %47 {strides = array<i32>} : memref<8x1xf32, #tpu.memory_space<vmem>>, vector<8x1xf32>,
    %c0_21 = arith.constant 0 : index
    %c0_22 = arith.constant 0 : index
    %49 = vector.load %arg7[%c0_21, %c0_22] : memref<8x1xf32, #tpu.memory_space<vmem>>, vector<8x1xf32>
    %cst_23 = arith.constant dense<0.000000e+00> : vector<8xf32>
    %50 = vector.multi_reduction <add>, %23, %cst_23 [1] : vector<8x128xf32> to vector<8xf32>
    %51 = vector.shape_cast %50 : vector<8xf32> to vector<8x1xf32>
    %52 = arith.addf %49, %51 : vector<8x1xf32>
    %c0_24 = arith.constant 0 : index
    %c0_25 = arith.constant 0 : index
    %53 = vector.load %arg7[%c0_24, %c0_25] : memref<8x1xf32, #tpu.memory_space<vmem>>, vector<8x1xf32>
    tpu.vector_store %arg7[%c0_24, %c0_25], %52 {strides = array<i32>} : memref<8x1xf32, #tpu.memory_space<vmem>>, vector<8x1xf32>,
    %c0_26 = arith.constant 0 : index
    %c0_27 = arith.constant 0 : index
    %54 = vector.load %arg8[%c0_26, %c0_27] : memref<8x1xf32, #tpu.memory_space<vmem>>, vector<8x1xf32>
    %cst_28 = arith.constant dense<0.000000e+00> : vector<8xf32>
    %55 = vector.multi_reduction <add>, %24, %cst_28 [1] : vector<8x128xf32> to vector<8xf32>
    %56 = vector.shape_cast %55 : vector<8xf32> to vector<8x1xf32>
    %57 = arith.addf %54, %56 : vector<8x1xf32>
    %c0_29 = arith.constant 0 : index
    %c0_30 = arith.constant 0 : index
    %58 = vector.load %arg8[%c0_29, %c0_30] : memref<8x1xf32, #tpu.memory_space<vmem>>, vector<8x1xf32>
    tpu.vector_store %arg8[%c0_29, %c0_30], %57 {strides = array<i32>} : memref<8x1xf32, #tpu.memory_space<vmem>>, vector<8x1xf32>,
    %c0_31 = arith.constant 0 : index
    %c0_32 = arith.constant 0 : index
    %59 = vector.load %arg9[%c0_31, %c0_32] : memref<8x1xf32, #tpu.memory_space<vmem>>, vector<8x1xf32>
    %cst_33 = arith.constant dense<0.000000e+00> : vector<8xf32>
    %60 = vector.multi_reduction <add>, %21, %cst_33 [1] : vector<8x128xf32> to vector<8xf32>
    %61 = vector.shape_cast %60 : vector<8xf32> to vector<8x1xf32>
    %62 = arith.addf %59, %61 : vector<8x1xf32>
    %c0_34 = arith.constant 0 : index
    %c0_35 = arith.constant 0 : index
    %63 = vector.load %arg9[%c0_34, %c0_35] : memref<8x1xf32, #tpu.memory_space<vmem>>, vector<8x1xf32>
    tpu.vector_store %arg9[%c0_34, %c0_35], %62 {strides = array<i32>} : memref<8x1xf32, #tpu.memory_space<vmem>>, vector<8x1xf32>,
    %c0_36 = arith.constant 0 : index
    %c0_37 = arith.constant 0 : index
    %64 = vector.load %arg10[%c0_36, %c0_37] : memref<8x1xf32, #tpu.memory_space<vmem>>, vector<8x1xf32>
    %cst_38 = arith.constant dense<0.000000e+00> : vector<8xf32>
    %65 = vector.multi_reduction <add>, %22, %cst_38 [1] : vector<8x128xf32> to vector<8xf32>
    %66 = vector.shape_cast %65 : vector<8xf32> to vector<8x1xf32>
    %67 = arith.addf %64, %66 : vector<8x1xf32>
    %c0_39 = arith.constant 0 : index
    %c0_40 = arith.constant 0 : index
    %68 = vector.load %arg10[%c0_39, %c0_40] : memref<8x1xf32, #tpu.memory_space<vmem>>, vector<8x1xf32>
    tpu.vector_store %arg10[%c0_39, %c0_40], %67 {strides = array<i32>} : memref<8x1xf32, #tpu.memory_space<vmem>>, vector<8x1xf32>,
    %c0_41 = arith.constant 0 : index
    %c0_42 = arith.constant 0 : index
    %69 = vector.load %arg11[%c0_41, %c0_42] : memref<8x1xf32, #tpu.memory_space<vmem>>, vector<8x1xf32>
    %cst_43 = arith.constant dense<0.000000e+00> : vector<8xf32>
    %70 = vector.multi_reduction <add>, %25, %cst_43 [1] : vector<8x128xf32> to vector<8xf32>
    %71 = vector.shape_cast %70 : vector<8xf32> to vector<8x1xf32>
    %72 = arith.addf %69, %71 : vector<8x1xf32>
    %c0_44 = arith.constant 0 : index
    %c0_45 = arith.constant 0 : index
    %73 = vector.load %arg11[%c0_44, %c0_45] : memref<8x1xf32, #tpu.memory_space<vmem>>, vector<8x1xf32>
    tpu.vector_store %arg11[%c0_44, %c0_45], %72 {strides = array<i32>} : memref<8x1xf32, #tpu.memory_space<vmem>>, vector<8x1xf32>,
    %c0_i32_46 = arith.constant 0 : i32
    %74 = arith.cmpi eq, %arg0, %c0_i32_46 : i32
    %75 = arith.extui %74 : i1 to i32
    %c0_i32_47 = arith.constant 0 : i32
    %76 = arith.cmpi ne, %75, %c0_i32_47 : i32
    scf.if %76 {
      %c0_48 = arith.constant 0 : index
      %c0_49 = arith.constant 0 : index
      %77 = vector.load %arg3[%c0_48, %c0_49] : memref<8x1xf32, #tpu.memory_space<vmem>>, vector<8x1xf32>
      %c0_50 = arith.constant 0 : index
      %c0_51 = arith.constant 0 : index
      %78 = vector.load %arg4[%c0_50, %c0_51] : memref<8x1xf32, #tpu.memory_space<vmem>>, vector<8x1xf32>
      %c0_52 = arith.constant 0 : index
      %c0_53 = arith.constant 0 : index
      %79 = vector.load %arg5[%c0_52, %c0_53] : memref<8x1xf32, #tpu.memory_space<vmem>>, vector<8x1xf32>
      %c0_54 = arith.constant 0 : index
      %c0_55 = arith.constant 0 : index
      %80 = vector.load %arg6[%c0_54, %c0_55] : memref<8x1xf32, #tpu.memory_space<vmem>>, vector<8x1xf32>
      %c0_56 = arith.constant 0 : index
      %c0_57 = arith.constant 0 : index
      %81 = vector.load %arg7[%c0_56, %c0_57] : memref<8x1xf32, #tpu.memory_space<vmem>>, vector<8x1xf32>
      %c0_58 = arith.constant 0 : index
      %c0_59 = arith.constant 0 : index
      %82 = vector.load %arg8[%c0_58, %c0_59] : memref<8x1xf32, #tpu.memory_space<vmem>>, vector<8x1xf32>
      %c0_60 = arith.constant 0 : index
      %c0_61 = arith.constant 0 : index
      %83 = vector.load %arg9[%c0_60, %c0_61] : memref<8x1xf32, #tpu.memory_space<vmem>>, vector<8x1xf32>
      %c0_62 = arith.constant 0 : index
      %c0_63 = arith.constant 0 : index
      %84 = vector.load %arg10[%c0_62, %c0_63] : memref<8x1xf32, #tpu.memory_space<vmem>>, vector<8x1xf32>
      %c0_64 = arith.constant 0 : index
      %c0_65 = arith.constant 0 : index
      %85 = vector.load %arg11[%c0_64, %c0_65] : memref<8x1xf32, #tpu.memory_space<vmem>>, vector<8x1xf32>
      %86 = vector.extract_strided_slice %77 {offsets = [3, 0], sizes = [1, 1], strides = [1, 1]} : vector<8x1xf32> to vector<1x1xf32>
      %87 = vector.extract_strided_slice %77 {offsets = [7, 0], sizes = [1, 1], strides = [1, 1]} : vector<8x1xf32> to vector<1x1xf32>
      %88 = vector.extract_strided_slice %78 {offsets = [3, 0], sizes = [1, 1], strides = [1, 1]} : vector<8x1xf32> to vector<1x1xf32>
      %89 = vector.extract_strided_slice %78 {offsets = [7, 0], sizes = [1, 1], strides = [1, 1]} : vector<8x1xf32> to vector<1x1xf32>
      %cst_66 = arith.constant 1.600000e+01 : f32
      %90 = vector.broadcast %cst_66 : f32 to vector<1x1xf32>
      %91 = arith.mulf %90, %87 : vector<1x1xf32>
      %cst_67 = arith.constant 4.800000e+01 : f32
      %92 = vector.broadcast %cst_67 : f32 to vector<1x1xf32>
      %93 = arith.addf %92, %91 : vector<1x1xf32>
      %cst_68 = arith.constant 1.200000e+01 : f32
      %94 = vector.broadcast %cst_68 : f32 to vector<1x1xf32>
      %95 = arith.mulf %94, %86 : vector<1x1xf32>
      %96 = arith.subf %93, %95 : vector<1x1xf32>
      %cst_69 = arith.constant 8.000000e+00 : f32
      %97 = vector.broadcast %cst_69 : f32 to vector<1x1xf32>
      %98 = arith.mulf %97, %89 : vector<1x1xf32>
      %99 = arith.addf %96, %98 : vector<1x1xf32>
      %cst_70 = arith.constant 2.000000e+00 : f32
      %100 = vector.broadcast %cst_70 : f32 to vector<1x1xf32>
      %101 = arith.mulf %100, %87 : vector<1x1xf32>
      %102 = arith.mulf %101, %86 : vector<1x1xf32>
      %103 = arith.subf %99, %102 : vector<1x1xf32>
      %cst_71 = arith.constant 6.000000e+00 : f32
      %104 = vector.broadcast %cst_71 : f32 to vector<1x1xf32>
      %105 = arith.mulf %104, %88 : vector<1x1xf32>
      %106 = arith.addf %103, %105 : vector<1x1xf32>
      %cst_72 = arith.constant 0.020833334 : f32
      %107 = vector.broadcast %cst_72 : f32 to vector<1x1xf32>
      %108 = arith.mulf %106, %107 : vector<1x1xf32>
      %109 = vector.extract_strided_slice %77 {offsets = [0, 0], sizes = [1, 1], strides = [1, 1]} : vector<8x1xf32> to vector<1x1xf32>
      %110 = vector.extract_strided_slice %77 {offsets = [1, 0], sizes = [1, 1], strides = [1, 1]} : vector<8x1xf32> to vector<1x1xf32>
      %111 = vector.extract_strided_slice %77 {offsets = [2, 0], sizes = [1, 1], strides = [1, 1]} : vector<8x1xf32> to vector<1x1xf32>
      %112 = vector.extract_strided_slice %77 {offsets = [4, 0], sizes = [1, 1], strides = [1, 1]} : vector<8x1xf32> to vector<1x1xf32>
      %113 = vector.extract_strided_slice %77 {offsets = [5, 0], sizes = [1, 1], strides = [1, 1]} : vector<8x1xf32> to vector<1x1xf32>
      %114 = vector.extract_strided_slice %77 {offsets = [6, 0], sizes = [1, 1], strides = [1, 1]} : vector<8x1xf32> to vector<1x1xf32>
      %115 = vector.extract_strided_slice %78 {offsets = [0, 0], sizes = [1, 1], strides = [1, 1]} : vector<8x1xf32> to vector<1x1xf32>
      %116 = vector.extract_strided_slice %78 {offsets = [1, 0], sizes = [1, 1], strides = [1, 1]} : vector<8x1xf32> to vector<1x1xf32>
      %117 = vector.extract_strided_slice %78 {offsets = [2, 0], sizes = [1, 1], strides = [1, 1]} : vector<8x1xf32> to vector<1x1xf32>
      %118 = vector.extract_strided_slice %78 {offsets = [4, 0], sizes = [1, 1], strides = [1, 1]} : vector<8x1xf32> to vector<1x1xf32>
      %119 = vector.extract_strided_slice %78 {offsets = [5, 0], sizes = [1, 1], strides = [1, 1]} : vector<8x1xf32> to vector<1x1xf32>
      %120 = vector.extract_strided_slice %78 {offsets = [6, 0], sizes = [1, 1], strides = [1, 1]} : vector<8x1xf32> to vector<1x1xf32>
      %121 = vector.extract_strided_slice %79 {offsets = [0, 0], sizes = [1, 1], strides = [1, 1]} : vector<8x1xf32> to vector<1x1xf32>
      %122 = vector.extract_strided_slice %79 {offsets = [1, 0], sizes = [1, 1], strides = [1, 1]} : vector<8x1xf32> to vector<1x1xf32>
      %123 = vector.extract_strided_slice %79 {offsets = [4, 0], sizes = [1, 1], strides = [1, 1]} : vector<8x1xf32> to vector<1x1xf32>
      %124 = vector.extract_strided_slice %79 {offsets = [5, 0], sizes = [1, 1], strides = [1, 1]} : vector<8x1xf32> to vector<1x1xf32>
      %125 = vector.extract_strided_slice %80 {offsets = [0, 0], sizes = [1, 1], strides = [1, 1]} : vector<8x1xf32> to vector<1x1xf32>
      %126 = vector.extract_strided_slice %80 {offsets = [1, 0], sizes = [1, 1], strides = [1, 1]} : vector<8x1xf32> to vector<1x1xf32>
      %127 = vector.extract_strided_slice %80 {offsets = [4, 0], sizes = [1, 1], strides = [1, 1]} : vector<8x1xf32> to vector<1x1xf32>
      %128 = vector.extract_strided_slice %80 {offsets = [5, 0], sizes = [1, 1], strides = [1, 1]} : vector<8x1xf32> to vector<1x1xf32>
      %129 = vector.extract_strided_slice %81 {offsets = [0, 0], sizes = [1, 1], strides = [1, 1]} : vector<8x1xf32> to vector<1x1xf32>
      %130 = vector.extract_strided_slice %81 {offsets = [1, 0], sizes = [1, 1], strides = [1, 1]} : vector<8x1xf32> to vector<1x1xf32>
      %131 = vector.extract_strided_slice %81 {offsets = [4, 0], sizes = [1, 1], strides = [1, 1]} : vector<8x1xf32> to vector<1x1xf32>
      %132 = vector.extract_strided_slice %81 {offsets = [5, 0], sizes = [1, 1], strides = [1, 1]} : vector<8x1xf32> to vector<1x1xf32>
      %133 = vector.extract_strided_slice %82 {offsets = [0, 0], sizes = [1, 1], strides = [1, 1]} : vector<8x1xf32> to vector<1x1xf32>
      %134 = vector.extract_strided_slice %82 {offsets = [1, 0], sizes = [1, 1], strides = [1, 1]} : vector<8x1xf32> to vector<1x1xf32>
      %135 = vector.extract_strided_slice %82 {offsets = [4, 0], sizes = [1, 1], strides = [1, 1]} : vector<8x1xf32> to vector<1x1xf32>
      %136 = vector.extract_strided_slice %82 {offsets = [5, 0], sizes = [1, 1], strides = [1, 1]} : vector<8x1xf32> to vector<1x1xf32>
      %137 = vector.extract_strided_slice %83 {offsets = [0, 0], sizes = [1, 1], strides = [1, 1]} : vector<8x1xf32> to vector<1x1xf32>
      %138 = vector.extract_strided_slice %83 {offsets = [4, 0], sizes = [1, 1], strides = [1, 1]} : vector<8x1xf32> to vector<1x1xf32>
      %139 = vector.extract_strided_slice %84 {offsets = [0, 0], sizes = [1, 1], strides = [1, 1]} : vector<8x1xf32> to vector<1x1xf32>
      %140 = vector.extract_strided_slice %84 {offsets = [4, 0], sizes = [1, 1], strides = [1, 1]} : vector<8x1xf32> to vector<1x1xf32>
      %141 = vector.extract_strided_slice %85 {offsets = [0, 0], sizes = [1, 1], strides = [1, 1]} : vector<8x1xf32> to vector<1x1xf32>
      %142 = vector.extract_strided_slice %85 {offsets = [4, 0], sizes = [1, 1], strides = [1, 1]} : vector<8x1xf32> to vector<1x1xf32>
      %cst_73 = arith.constant 6.000000e+00 : f32
      %143 = vector.broadcast %cst_73 : f32 to vector<1x1xf32>
      %144 = arith.mulf %143, %121 : vector<1x1xf32>
      %145 = arith.mulf %109, %114 : vector<1x1xf32>
      %146 = arith.subf %144, %145 : vector<1x1xf32>
      %147 = arith.mulf %111, %112 : vector<1x1xf32>
      %148 = arith.subf %146, %147 : vector<1x1xf32>
      %cst_74 = arith.constant 8.000000e+00 : f32
      %149 = vector.broadcast %cst_74 : f32 to vector<1x1xf32>
      %150 = arith.mulf %149, %123 : vector<1x1xf32>
      %151 = arith.addf %148, %150 : vector<1x1xf32>
      %cst_75 = arith.constant 6.000000e+00 : f32
      %152 = vector.broadcast %cst_75 : f32 to vector<1x1xf32>
      %153 = arith.mulf %152, %122 : vector<1x1xf32>
      %154 = arith.mulf %110, %114 : vector<1x1xf32>
      %155 = arith.subf %153, %154 : vector<1x1xf32>
      %156 = arith.mulf %111, %113 : vector<1x1xf32>
      %157 = arith.subf %155, %156 : vector<1x1xf32>
      %cst_76 = arith.constant 8.000000e+00 : f32
      %158 = vector.broadcast %cst_76 : f32 to vector<1x1xf32>
      %159 = arith.mulf %158, %124 : vector<1x1xf32>
      %160 = arith.addf %157, %159 : vector<1x1xf32>
      %cst_77 = arith.constant 6.000000e+00 : f32
      %161 = vector.broadcast %cst_77 : f32 to vector<1x1xf32>
      %162 = arith.mulf %161, %133 : vector<1x1xf32>
      %cst_78 = arith.constant 2.000000e+00 : f32
      %163 = vector.broadcast %cst_78 : f32 to vector<1x1xf32>
      %164 = arith.mulf %163, %129 : vector<1x1xf32>
      %165 = arith.mulf %164, %114 : vector<1x1xf32>
      %166 = arith.subf %162, %165 : vector<1x1xf32>
      %167 = arith.mulf %115, %120 : vector<1x1xf32>
      %168 = arith.addf %166, %167 : vector<1x1xf32>
      %cst_79 = arith.constant 2.000000e+00 : f32
      %169 = vector.broadcast %cst_79 : f32 to vector<1x1xf32>
      %170 = arith.mulf %169, %125 : vector<1x1xf32>
      %171 = arith.mulf %170, %112 : vector<1x1xf32>
      %172 = arith.subf %168, %171 : vector<1x1xf32>
      %cst_80 = arith.constant 4.000000e+00 : f32
      %173 = vector.broadcast %cst_80 : f32 to vector<1x1xf32>
      %174 = arith.mulf %173, %121 : vector<1x1xf32>
      %175 = arith.mulf %174, %123 : vector<1x1xf32>
      %176 = arith.addf %172, %175 : vector<1x1xf32>
      %cst_81 = arith.constant 2.000000e+00 : f32
      %177 = vector.broadcast %cst_81 : f32 to vector<1x1xf32>
      %178 = arith.mulf %177, %109 : vector<1x1xf32>
      %179 = arith.mulf %178, %127 : vector<1x1xf32>
      %180 = arith.subf %176, %179 : vector<1x1xf32>
      %181 = arith.mulf %117, %118 : vector<1x1xf32>
      %182 = arith.addf %180, %181 : vector<1x1xf32>
      %cst_82 = arith.constant 2.000000e+00 : f32
      %183 = vector.broadcast %cst_82 : f32 to vector<1x1xf32>
      %184 = arith.mulf %183, %111 : vector<1x1xf32>
      %185 = arith.mulf %184, %131 : vector<1x1xf32>
      %186 = arith.subf %182, %185 : vector<1x1xf32>
      %cst_83 = arith.constant 8.000000e+00 : f32
      %187 = vector.broadcast %cst_83 : f32 to vector<1x1xf32>
      %188 = arith.mulf %187, %135 : vector<1x1xf32>
      %189 = arith.addf %186, %188 : vector<1x1xf32>
      %cst_84 = arith.constant 6.000000e+00 : f32
      %190 = vector.broadcast %cst_84 : f32 to vector<1x1xf32>
      %191 = arith.mulf %190, %134 : vector<1x1xf32>
      %cst_85 = arith.constant 2.000000e+00 : f32
      %192 = vector.broadcast %cst_85 : f32 to vector<1x1xf32>
      %193 = arith.mulf %192, %130 : vector<1x1xf32>
      %194 = arith.mulf %193, %114 : vector<1x1xf32>
      %195 = arith.subf %191, %194 : vector<1x1xf32>
      %196 = arith.mulf %116, %120 : vector<1x1xf32>
      %197 = arith.addf %195, %196 : vector<1x1xf32>
      %cst_86 = arith.constant 2.000000e+00 : f32
      %198 = vector.broadcast %cst_86 : f32 to vector<1x1xf32>
      %199 = arith.mulf %198, %126 : vector<1x1xf32>
      %200 = arith.mulf %199, %113 : vector<1x1xf32>
      %201 = arith.subf %197, %200 : vector<1x1xf32>
      %cst_87 = arith.constant 4.000000e+00 : f32
      %202 = vector.broadcast %cst_87 : f32 to vector<1x1xf32>
      %203 = arith.mulf %202, %122 : vector<1x1xf32>
      %204 = arith.mulf %203, %124 : vector<1x1xf32>
      %205 = arith.addf %201, %204 : vector<1x1xf32>
      %cst_88 = arith.constant 2.000000e+00 : f32
      %206 = vector.broadcast %cst_88 : f32 to vector<1x1xf32>
      %207 = arith.mulf %206, %110 : vector<1x1xf32>
      %208 = arith.mulf %207, %128 : vector<1x1xf32>
      %209 = arith.subf %205, %208 : vector<1x1xf32>
      %210 = arith.mulf %117, %119 : vector<1x1xf32>
      %211 = arith.addf %209, %210 : vector<1x1xf32>
      %cst_89 = arith.constant 2.000000e+00 : f32
      %212 = vector.broadcast %cst_89 : f32 to vector<1x1xf32>
      %213 = arith.mulf %212, %111 : vector<1x1xf32>
      %214 = arith.mulf %213, %132 : vector<1x1xf32>
      %215 = arith.subf %211, %214 : vector<1x1xf32>
      %cst_90 = arith.constant 8.000000e+00 : f32
      %216 = vector.broadcast %cst_90 : f32 to vector<1x1xf32>
      %217 = arith.mulf %216, %136 : vector<1x1xf32>
      %218 = arith.addf %215, %217 : vector<1x1xf32>
      %cst_91 = arith.constant 6.000000e+00 : f32
      %219 = vector.broadcast %cst_91 : f32 to vector<1x1xf32>
      %220 = arith.mulf %219, %141 : vector<1x1xf32>
      %cst_92 = arith.constant 2.000000e+00 : f32
      %221 = vector.broadcast %cst_92 : f32 to vector<1x1xf32>
      %222 = arith.mulf %221, %139 : vector<1x1xf32>
      %223 = arith.mulf %222, %114 : vector<1x1xf32>
      %224 = arith.subf %220, %223 : vector<1x1xf32>
      %225 = arith.mulf %137, %120 : vector<1x1xf32>
      %226 = arith.addf %224, %225 : vector<1x1xf32>
      %227 = arith.mulf %125, %113 : vector<1x1xf32>
      %228 = arith.subf %226, %227 : vector<1x1xf32>
      %cst_93 = arith.constant 2.000000e+00 : f32
      %229 = vector.broadcast %cst_93 : f32 to vector<1x1xf32>
      %230 = arith.mulf %229, %121 : vector<1x1xf32>
      %231 = arith.mulf %230, %124 : vector<1x1xf32>
      %232 = arith.addf %228, %231 : vector<1x1xf32>
      %233 = arith.mulf %109, %128 : vector<1x1xf32>
      %234 = arith.subf %232, %233 : vector<1x1xf32>
      %235 = arith.mulf %126, %112 : vector<1x1xf32>
      %236 = arith.subf %234, %235 : vector<1x1xf32>
      %cst_94 = arith.constant 2.000000e+00 : f32
      %237 = vector.broadcast %cst_94 : f32 to vector<1x1xf32>
      %238 = arith.mulf %237, %122 : vector<1x1xf32>
      %239 = arith.mulf %238, %123 : vector<1x1xf32>
      %240 = arith.addf %236, %239 : vector<1x1xf32>
      %241 = arith.mulf %110, %127 : vector<1x1xf32>
      %242 = arith.subf %240, %241 : vector<1x1xf32>
      %243 = arith.mulf %117, %138 : vector<1x1xf32>
      %244 = arith.addf %242, %243 : vector<1x1xf32>
      %cst_95 = arith.constant 2.000000e+00 : f32
      %245 = vector.broadcast %cst_95 : f32 to vector<1x1xf32>
      %246 = arith.mulf %245, %111 : vector<1x1xf32>
      %247 = arith.mulf %246, %140 : vector<1x1xf32>
      %248 = arith.subf %244, %247 : vector<1x1xf32>
      %cst_96 = arith.constant 8.000000e+00 : f32
      %249 = vector.broadcast %cst_96 : f32 to vector<1x1xf32>
      %250 = arith.mulf %249, %142 : vector<1x1xf32>
      %251 = arith.addf %248, %250 : vector<1x1xf32>
      %cst_97 = arith.constant 0.020833334 : f32
      %252 = vector.broadcast %cst_97 : f32 to vector<1x1xf32>
      %253 = arith.mulf %151, %252 : vector<1x1xf32>
      %cst_98 = arith.constant 0.020833334 : f32
      %254 = vector.broadcast %cst_98 : f32 to vector<1x1xf32>
      %255 = arith.mulf %160, %254 : vector<1x1xf32>
      %cst_99 = arith.constant 0.020833334 : f32
      %256 = vector.broadcast %cst_99 : f32 to vector<1x1xf32>
      %257 = arith.mulf %251, %256 : vector<1x1xf32>
      %258 = arith.mulf %151, %151 : vector<1x1xf32>
      %cst_100 = arith.constant 0.020833334 : f32
      %259 = vector.broadcast %cst_100 : f32 to vector<1x1xf32>
      %260 = arith.mulf %258, %259 : vector<1x1xf32>
      %261 = arith.subf %189, %260 : vector<1x1xf32>
      %cst_101 = arith.constant 0.020842379 : f32
      %262 = vector.broadcast %cst_101 : f32 to vector<1x1xf32>
      %263 = arith.mulf %262, %261 : vector<1x1xf32>
      %cst_102 = arith.constant 0.000000e+00 : f32
      %264 = vector.broadcast %cst_102 : f32 to vector<1x1xf32>
      %265 = arith.maximumf %263, %264 : vector<1x1xf32>
      %266 = arith.mulf %160, %160 : vector<1x1xf32>
      %cst_103 = arith.constant 0.020833334 : f32
      %267 = vector.broadcast %cst_103 : f32 to vector<1x1xf32>
      %268 = arith.mulf %266, %267 : vector<1x1xf32>
      %269 = arith.subf %218, %268 : vector<1x1xf32>
      %cst_104 = arith.constant 0.020842379 : f32
      %270 = vector.broadcast %cst_104 : f32 to vector<1x1xf32>
      %271 = arith.mulf %270, %269 : vector<1x1xf32>
      %cst_105 = arith.constant 0.000000e+00 : f32
      %272 = vector.broadcast %cst_105 : f32 to vector<1x1xf32>
      %273 = arith.maximumf %271, %272 : vector<1x1xf32>
      %274 = arith.mulf %253, %255 : vector<1x1xf32>
      %275 = arith.subf %257, %274 : vector<1x1xf32>
      %276 = arith.mulf %265, %273 : vector<1x1xf32>
      %277 = math.rsqrt %276 : vector<1x1xf32>
      %278 = arith.mulf %275, %277 : vector<1x1xf32>
      %279 = arith.cmpf one, %278, %278 : vector<1x1xf32>
      %cst_106 = arith.constant 0.000000e+00 : f32
      %280 = vector.broadcast %cst_106 : f32 to vector<1x1xf32>
      %281 = arith.select %279, %280, %278 : vector<1x1xi1>, vector<1x1xf32>
      %282 = math.absf %281 : vector<1x1xf32>
      %cst_107 = arith.constant 5.000000e-01 : f32
      %283 = vector.broadcast %cst_107 : f32 to vector<1x1xf32>
      %284 = arith.mulf %283, %282 : vector<1x1xf32>
      %285 = arith.addf %108, %284 : vector<1x1xf32>
      %c0_108 = arith.constant 0 : index
      %c0_109 = arith.constant 0 : index
      %286 = vector.load %arg2[%c0_108, %c0_109] : memref<1x1xf32, #tpu.memory_space<vmem>>, vector<1x1xf32>
      tpu.vector_store %arg2[%c0_108, %c0_109], %285 {strides = array<i32>} : memref<1x1xf32, #tpu.memory_space<vmem>>, vector<1x1xf32>,
    } else {
    }
    return
  }
  func.func @transform_0(%arg0: i32) -> (i32, i32) {
    %c0_i32 = arith.constant 0 : i32
    %c0_i32_0 = arith.constant 0 : i32
    return %c0_i32, %arg0 : i32, i32
  }
  func.func @transform_1(%arg0: i32) -> (i32, i32) {
    %c0_i32 = arith.constant 0 : i32
    %c0_i32_0 = arith.constant 0 : i32
    %c0_i32_1 = arith.constant 0 : i32
    return %c0_i32, %c0_i32_0 : i32, i32
  }
}

</mosaic_0001>

<bundles_post_ra>
// kernel: tpu_custom_call.1
= control target key start
LH: loop header
LB: loop body
LE: loop exit
PB: predicated region body
PF: predicated region fallthrough
CT: control target
= control target key end

     0   :  { %6 = vsyncpa [#allocation12], 0  ;;  %s538_s0 = inlined_call_operand.hbm [shape: f32[8,128], index: 0, kind: input, shape index: {}]   ;;  %s539_s1 = inlined_call_operand.hbm [shape: f32[1,1], index: 1, kind: output, shape index: {}]  }
   0x1   :  { %7 = vsyncpa [#allocation13], 0  ;;  %s399_s6 = smov [#allocation11]   ;;  %s351_s10 = scalar_lea.hbm %s538_s0, 128 }
   0x2   :  { %s14_s7 = sshll.u32 %s399_s6, 4  ;;  %p352_p0 = scmp.ne.s32.totalorder %s538_s0, %s351_s10  ;;  %s15_s7 = int_to_ptr.vmem [resolvable:$true] %s14_s7 }
   0x3   :  { %p355_p1 = scmp.lt.u32.totalorder %s351_s10, %s538_s0 }
   0x5   :  { %p357_p2 = pnand %p355_p1, %p352_p0 }
   0x7   :  { %360 = shalt.err (!%p357_p2)
}
   0x8   :  { %s361_s15 = scalar_lea.vmem %s15_s7, 128  ;;  %p366_p4 = scmp.lt.s32.totalorder %s15_s7, %s15_s7 }
   0x9   :  { %p362_p3 = scmp.ne.s32.totalorder %s15_s7, %s361_s15  ;;  %p367_p5 = scmp.lt.s32.totalorder %s361_s15, %s361_s15 }
   0xb   :  { %p368_p6 = por %p367_p5, %p366_p4 }
   0xd   :  { %p369_p7 = pnand %p368_p6, %p362_p3 }
   0xf   :  { %372 = shalt.err (!%p369_p7)
}
  0x10   :  { %17 = dma.hbm_to_vmem [thread:$0]  %s538_s0, 128, %s15_s7, [#allocation12]  }
  0x11   :  { %395 = dma.done.wait [#allocation12], 128  }
  0x12   :  { %396 = vsyncadd [#allocation12], 4294967168  ;;  %v22_v0 = vlaneseq  ;;  %vm55_vm0 = vcmask 7168   ;;  %v400_v1 = vmov 0.0   ;;  %v21_v7 = vld [vmem:[#allocation11] sm:$0xff]  ;;  %s401_s0 = smov [#allocation14]  }
  0x13   :  { %56 = vst.msk [vmem:[#allocation2] sm:$0xff] %vm55_vm0, %v400_v1  ;;  %57 = vst.msk [vmem:[#allocation3] sm:$0xff] %vm55_vm0, %v400_v1  ;;  %66 = vadd.xlane.f32.xlu0 %v21_v7  ;;  %v43_v8 = vmul.f32 %v21_v7, %v21_v7  ;;  %s337_s18 = sshll.u32 %s401_s0, 4  ;;  %vm329_vm3 = vcmask 7175   ;;  %s338_s18 = int_to_ptr.vmem [resolvable:$true] %s337_s18 }
  0x14   :  { %58 = vst.msk [vmem:[#allocation4] sm:$0xff] %vm55_vm0, %v400_v1  ;;  %59 = vst.msk [vmem:[#allocation5] sm:$0xff] %vm55_vm0, %v400_v1  ;;  %v23_v2 = vshrl.u32 %v22_v0, 7  ;;  %s373_s19 = scalar_lea.vmem %s338_s18, 16  ;;  %s377_s20 = scalar_lea.vmem %s338_s18, 32 }
  0x15   :  { %60 = vst.msk [vmem:[#allocation6] sm:$0xff] %vm55_vm0, %v400_v1  ;;  %61 = vst.msk [vmem:[#allocation7] sm:$0xff] %vm55_vm0, %v400_v1  ;;  %72 = vadd.xlane.f32.xlu1 %v43_v8  ;;  %p374_p8 = scmp.ne.s32.totalorder %s338_s18, %s373_s19  ;;  %p378_p9 = scmp.lt.s32.totalorder %s338_s18, %s338_s18 }
  0x16   :  { %62 = vst.msk [vmem:[#allocation8] sm:$0xff] %vm55_vm0, %v400_v1  ;;  %63 = vst.msk [vmem:[#allocation9] sm:$0xff] %vm55_vm0, %v400_v1  ;;  %v27_v3 = vsub.s32 2, %v23_v2  ;;  %v31_v4 = vsub.s32 6, %v23_v2  ;;  %v36_v5 = vsub.s32 1, %v23_v2  ;;  %v40_v6 = vsub.s32 5, %v23_v2  ;;  %p379_p10 = scmp.lt.s32.totalorder %s377_s20, %s373_s19 }
  0x17   :  { %64 = vst.msk [vmem:[#allocation10] sm:$0xff] %vm55_vm0, %v400_v1  ;;  %vm24_vm1 = vcmp.lt.s32.totalorder %v23_v2, 4 }
  0x18   :  { %v28_v9 = vrot.slane %v21_v7, %v27_v3  ;;  %v32_v10 = vrot.slane %v21_v7, %v31_v4  ;;  %v37_v11 = vrot.slane %v21_v7, %v36_v5  ;;  %v41_v12 = vrot.slane %v21_v7, %v40_v6  ;;  %p380_p11 = por %p379_p10, %p378_p9 }
  0x1a   :  { %v33_v13 = vsel %vm24_vm1, %v28_v9, %v32_v10  ;;  %v42_v16 = vsel %vm24_vm1, %v37_v11, %v41_v12  ;;  %v65_v22 = vld [vmem:[#allocation2] sm:$0xff]  ;;  %v71_v24 = vld [vmem:[#allocation3] sm:$0xff]  ;;  %p381_p12 = pnand %p380_p11, %p374_p8 }
  0x1b   :  { %v48_v14 = vmul.f32 %v43_v8, %v33_v13  ;;  %v44_v15 = vmul.f32 %v33_v13, %v21_v7  ;;  %v46_v17 = vmul.f32 %v42_v16, %v21_v7  ;;  %v81_v33 = vld [vmem:[#allocation5] sm:$0xff]  ;;  %v76_v36 = vld [vmem:[#allocation4] sm:$0xff] }
  0x1c   :  { %v86_v28 = vld [vmem:[#allocation6] sm:$0xff]  ;;  %v91_v30 = vld [vmem:[#allocation7] sm:$0xff] }
  0x1d   :  { %87 = vadd.xlane.f32.xlu0 %v48_v14  ;;  %v49_v18 = vmul.f32 %v44_v15, %v44_v15  ;;  %v45_v19 = vmul.f32 %v44_v15, %v33_v13  ;;  %v47_v20 = vmul.f32 %v46_v17, %v33_v13  ;;  %v101_v39 = vld [vmem:[#allocation9] sm:$0xff]  ;;  %v96_v47 = vld [vmem:[#allocation8] sm:$0xff] }
  0x1e   :  { %v106_v44 = vld [vmem:[#allocation10] sm:$0xff] }
  0x1f   :  { %92 = vadd.xlane.f32.xlu1 %v49_v18  ;;  %v50_v21 = vmul.f32 %v47_v20, %v33_v13 }
  0x21   :  { %82 = vadd.xlane.f32.xlu0 %v45_v19 }
  0x23   :  { %77 = vadd.xlane.f32.xlu1 %v44_v15 }
  0x25   :  { %102 = vadd.xlane.f32.xlu0 %v47_v20 }
  0x27   :  { %107 = vadd.xlane.f32.xlu1 %v50_v21 }
  0x29   :  { %97 = vadd.xlane.f32.xlu0 %v46_v17 }
  0xa0   :  { %v67_v23 = vpop.xlane.xlu0 %66 }
  0xa1   :  { %v68_v25 = vadd.f32 %v67_v23, %v65_v22 }
  0xa2   :  { %v73_v26 = vpop.xlane.xlu1 %72 }
  0xa3   :  { %70 = vst.msk [vmem:[#allocation2] sm:$0xff] %vm55_vm0, %v68_v25  ;;  %v74_v27 = vadd.f32 %v73_v26, %v71_v24 }
  0xa5   :  { %75 = vst.msk [vmem:[#allocation3] sm:$0xff] %vm55_vm0, %v74_v27 }
  0xaa   :  { %v88_v29 = vpop.xlane.xlu0 %87  ;;  %v437_v40 = vld [vmem:[#allocation2] sm:$0xff] }
  0xab   :  { %v89_v31 = vadd.f32 %v88_v29, %v86_v28  ;;  %v149_v49 = vrot.slane %v437_v40, 2  ;;  %v165_v50 = vrot.slane %v437_v40, 3  ;;  %v145_v52 = vrot.slane %v437_v40, 6 }
  0xac   :  { %v93_v32 = vpop.xlane.xlu1 %92  ;;  %v440_v42 = vld [vmem:[#allocation3] sm:$0xff]  ;;  %v452_v57 = vrot.slane %v437_v40, 5  ;;  %v134_v62 = vrot.slane %v437_v40, 4  ;;  %v469_v6 = vmul.f32 2.0, %v437_v40 }
  0xad   :  { %90 = vst.msk [vmem:[#allocation6] sm:$0xff] %vm55_vm0, %v89_v31  ;;  %v94_v34 = vadd.f32 %v93_v32, %v91_v30  ;;  %v178_v54 = vrot.slane %v440_v42, 6  ;;  %v151_v63 = vmul.f32 %v149_v49, %v437_v40  ;;  %v167_v0 = vmul.f32 %v165_v50, %v437_v40 }
  0xae   :  { %v83_v35 = vpop.xlane.xlu0 %82  ;;  %v196_v4 = vrot.slane %v440_v42, 2  ;;  %v147_v7 = vmul.f32 %v145_v52, %v437_v40  ;;  %v163_v8 = vmul.f32 %v452_v57, %v437_v40  ;;  %v218_v27 = vrot.slane %v440_v42, 5 }
  0xaf   :  { %95 = vst.msk [vmem:[#allocation7] sm:$0xff] %vm55_vm0, %v94_v34  ;;  %v84_v37 = vadd.f32 %v83_v35, %v81_v33  ;;  %v180_v2 = vmul.f32 %v178_v54, %v440_v42  ;;  %v153_v14 = vrot.slane %v151_v63, 2  ;;  %v169_v20 = vrot.slane %v167_v0, 1 }
  0xb0   :  { %v78_v38 = vpop.xlane.xlu1 %77  ;;  %v198_v22 = vmul.f32 %v196_v4, %v440_v42  ;;  %v225_v31 = vrot.slane %v440_v42, 3  ;;  %v220_v34 = vmul.f32 %v218_v27, %v440_v42 }
  0xb1   :  { %85 = vst.msk [vmem:[#allocation5] sm:$0xff] %vm55_vm0, %v84_v37  ;;  %v79_v41 = vadd.f32 %v78_v38, %v76_v36 }
  0xb2   :  { %v103_v43 = vpop.xlane.xlu0 %102  ;;  %v200_v38 = vrot.slane %v198_v22, 2 }
  0xb3   :  { %80 = vst.msk [vmem:[#allocation4] sm:$0xff] %vm55_vm0, %v79_v41  ;;  %v104_v45 = vadd.f32 %v103_v43, %v101_v39 }
  0xb4   :  { %v108_v46 = vpop.xlane.xlu1 %107  ;;  %v443_v48 = vld [vmem:[#allocation6] sm:$0xff] }
  0xb5   :  { %105 = vst.msk [vmem:[#allocation9] sm:$0xff] %vm55_vm0, %v104_v45  ;;  %v109_v51 = vadd.f32 %v108_v46, %v106_v44  ;;  %v174_v53 = vmul.f32 2.0, %v443_v48  ;;  %v204_v17 = vrot.slane %v443_v48, 2  ;;  %v232_v41 = vrot.slane %v443_v48, 3 }
  0xb6   :  { %v98_v55 = vpop.xlane.xlu0 %97  ;;  %v119_v56 = vld [vmem:[#allocation7] sm:$0xff] }
  0xb7   :  { %110 = vst.msk [vmem:[#allocation10] sm:$0xff] %vm55_vm0, %v109_v51  ;;  %v99_v58 = vadd.f32 %v98_v55, %v96_v47  ;;  %v173_v59 = vmul.f32 6.0, %v119_v56  ;;  %v175_v60 = vmul.f32 %v174_v53, %v145_v52  ;;  %v216_v9 = vmul.f32 %v174_v53, %v452_v57 }
  0xb8   :  { %v455_v61 = vld [vmem:[#allocation5] sm:$0xff]  ;;  %v211_v25 = vmul.f32 8.0, %v119_v56  ;;  %v206_v39 = vmul.f32 %v204_v17, %v469_v6  ;;  %v227_v51 = vmul.f32 %v225_v31, %v440_v42  ;;  %v234_v48 = vmul.f32 %v232_v41, %v469_v6 }
  0xb9   :  { %100 = vst.msk [vmem:[#allocation8] sm:$0xff] %vm55_vm0, %v99_v58  ;;  %v176_v1 = vsub.f32 %v173_v59, %v175_v60  ;;  %v182_v3 = vmul.f32 2.0, %v455_v61  ;;  %v192_v13 = vrot.slane %v455_v61, 4  ;;  %v217_v26 = vsub.f32 %v173_v59, %v216_v9 }
  0xba   :  { %v466_v5 = vld [vmem:[#allocation4] sm:$0xff]  ;;  %v208_v63 = vrot.slane %v206_v39, 2 }
  0xbb   :  { %v144_v10 = vmul.f32 6.0, %v466_v5  ;;  %v181_v11 = vadd.f32 %v180_v2, %v176_v1  ;;  %v183_v12 = vmul.f32 %v182_v3, %v134_v62  ;;  %v185_v15 = vmul.f32 4.0, %v466_v5 }
  0xbc   :  { %v187_v16 = vrot.slane %v466_v5, 4  ;;  %v482_v18 = vld [vmem:[#allocation9] sm:$0xff]  ;;  %v156_v28 = vmul.f32 8.0, %v466_v5  ;;  %v194_v30 = vmul.f32 %v192_v13, %v469_v6  ;;  %v221_v44 = vadd.f32 %v220_v34, %v217_v26 }
  0xbd   :  { %v148_v19 = vsub.f32 %v144_v10, %v147_v7  ;;  %v184_v21 = vsub.f32 %v181_v11, %v183_v12  ;;  %v164_v29 = vsub.f32 %v144_v10, %v163_v8  ;;  %v241_v36 = vmul.f32 2.0, %v482_v18 }
  0xbe   :  { %v485_v23 = vld [vmem:[#allocation10] sm:$0xff]  ;;  %v189_v24 = vmul.f32 %v187_v16, %v185_v15  ;;  %v158_v47 = vrot.slane %v156_v28, 4  ;;  %v248_v53 = vmul.f32 2.0, %v466_v5  ;;  %v222_v56 = vsub.f32 %v221_v44, %v183_v12 }
  0xbf   :  { %v240_v35 = vmul.f32 6.0, %v485_v23  ;;  %v155_v37 = vsub.f32 %v148_v19, %v153_v14  ;;  %v242_v45 = vmul.f32 %v241_v36, %v145_v52  ;;  %v171_v49 = vsub.f32 %v164_v29, %v169_v20 }
  0xc0   :  { %v120_v32 = vld [vmem:[#allocation8] sm:$0xff]  ;;  %v190_v33 = vadd.f32 %v189_v24, %v184_v21  ;;  %v249_v59 = vrot.slane %v466_v5, 5  ;;  %v262_v0 = vrot.slane %v466_v5, 3  ;;  %v223_v52 = vadd.f32 %v222_v56, %v189_v24 }
  0xc1   :  { %v244_v46 = vmul.f32 %v178_v54, %v120_v32  ;;  %v243_v58 = vsub.f32 %v240_v35, %v242_v45  ;;  %v499_v60 = vadd.f32 %v158_v47, %v155_v37  ;;  %v246_v1 = vmul.f32 %v452_v57, %v455_v61 }
  0xc2   :  { %v195_v43 = vsub.f32 %v190_v33, %v194_v30  ;;  %v253_v2 = vrot.slane %v455_v61, 5  ;;  %v172_v3 = vadd.f32 %v171_v49, %v158_v47  ;;  %v229_v7 = vrot.slane %v227_v51, 1 }
  0xc3   :  { %v245_v54 = vadd.f32 %v244_v46, %v243_v58  ;;  %v257_v8 = vmul.f32 %v165_v50, %v455_v61  ;;  %v224_v9 = vsub.f32 %v223_v52, %v194_v30  ;;  %v251_v11 = vmul.f32 %v249_v59, %v248_v53 }
  0xc4   :  { %v202_v55 = vadd.f32 %v200_v38, %v195_v43  ;;  %v269_v12 = vrot.slane %v455_v61, 3  ;;  %v213_v5 = vrot.slane %v211_v25, 4  ;;  %v236_v13 = vrot.slane %v234_v48, 1 }
  0xc5   :  { %v247_v10 = vsub.f32 %v245_v54, %v246_v1  ;;  %v264_v14 = vmul.f32 %v262_v0, %v248_v53  ;;  %v231_v15 = vadd.f32 %v229_v7, %v224_v9  ;;  %v255_v57 = vmul.f32 %v253_v2, %v437_v40 }
  0xc6   :  { %v210_v4 = vsub.f32 %v202_v55, %v208_v63  ;;  %v277_v17 = vrot.slane %v120_v32, 2  ;;  %v259_v20 = vrot.slane %v257_v8, 1  ;;  %v300_v21 = vmul.f32 %v499_v60, %v499_v60 }
  0xc7   :  { %v252_v16 = vadd.f32 %v251_v11, %v247_v10  ;;  %v238_v22 = vsub.f32 %v231_v15, %v236_v13  ;;  %v271_v24 = vmul.f32 %v269_v12, %v437_v40  ;;  %v305_v26 = vmul.f32 %v172_v3, %v172_v3 }
  0xc8   :  { %v215_v19 = vadd.f32 %v213_v5, %v210_v4  ;;  %v266_v27 = vrot.slane %v264_v14, 1  ;;  %v285_v61 = vrot.slane %v482_v18, 2  ;;  %v301_v25 = vmul.f32 0.020833334, %v300_v21 }
  0xc9   :  { %v256_v50 = vsub.f32 %v252_v16, %v255_v57  ;;  %v239_v28 = vadd.f32 %v238_v22, %v213_v5  ;;  %v279_v30 = vmul.f32 %v277_v17, %v440_v42  ;;  %v306_v31 = vmul.f32 0.020833334, %v305_v26 }
  0xca   :  { %v302_v32 = vsub.f32 %v215_v19, %v301_v25  ;;  %v273_v34 = vrot.slane %v271_v24, 1  ;;  %v287_v36 = vmul.f32 %v285_v61, %v469_v6  ;;  %v123_v18 = vmul.f32 16.0, %v437_v40 }
  0xcb   :  { %v261_v29 = vsub.f32 %v256_v50, %v259_v20  ;;  %v307_v35 = vsub.f32 %v239_v28, %v306_v31  ;;  %v281_v38 = vrot.slane %v279_v30, 2  ;;  %v125_v45 = vmul.f32 12.0, %v437_v40 }
  0xcc   :  { %v303_v39 = vmul.f32 0.020842379, %v302_v32  ;;  %v289_v46 = vrot.slane %v287_v36, 2  ;;  %v292_v47 = vmul.f32 8.0, %v485_v23  ;;  %v124_v56 = vadd.f32 48.0, %v123_v18 }
  0xcd   :  { %v268_v33 = vadd.f32 %v266_v27, %v261_v29  ;;  %v308_v41 = vmul.f32 0.020842379, %v307_v35  ;;  %v127_v58 = vrot.slane %v125_v45, 4  ;;  %v298_v63 = vmul.f32 0.020833334, %v172_v3 }
  0xce   :  { %v304_v49 = vmax.f32 %v303_v39, 0.0  ;;  %v294_v59 = vrot.slane %v292_v47, 4  ;;  %v130_v52 = vmul.f32 8.0, %v440_v42  ;;  %v297_v1 = vmul.f32 0.020833334, %v499_v60 }
  0xcf   :  { %v275_v37 = vsub.f32 %v268_v33, %v273_v34  ;;  %v309_v44 = vmax.f32 %v308_v41, 0.0  ;;  %v129_v0 = vsub.f32 %v124_v56, %v127_v58  ;;  %v311_v54 = vrot.slane %v298_v63, 1 }
  0xd0   :  { %v136_v23 = vmul.f32 %v134_v62, %v469_v6  ;;  %v138_v8 = vmul.f32 6.0, %v440_v42 }
  0xd1   :  { %v283_v43 = vadd.f32 %v281_v38, %v275_v37  ;;  %v316_v51 = vrot.slane %v309_v44, 1  ;;  %v131_v4 = vadd.f32 %v130_v52, %v129_v0  ;;  %v313_v7 = vmul.f32 %v311_v54, %v297_v1 }
  0xd2   :  { %v140_v12 = vrot.slane %v138_v8, 4 }
  0xd3   :  { %v291_v53 = vsub.f32 %v283_v43, %v289_v46  ;;  %v318_v55 = vmul.f32 %v316_v51, %v304_v49  ;;  %v137_v3 = vsub.f32 %v131_v4, %v136_v23 }
  0xd5   :  { %349 = vrsqrt.f32 %v318_v55  ;;  %v296_v48 = vadd.f32 %v294_v59, %v291_v53  ;;  %v142_v13 = vadd.f32 %v140_v12, %v137_v3 }
  0xd7   :  { %v299_v2 = vmul.f32 0.020833334, %v296_v48  ;;  %v143_v60 = vmul.f32 0.020833334, %v142_v13 }
  0xd9   :  { %v314_v9 = vsub.f32 %v299_v2, %v313_v7 }
  0xdf   :  { %v350_v10 = vpop.eup %349 }
  0xe0   :  { %v320_v11 = vmul.f32 %v350_v10, %v314_v9 }
  0xe2   :  { %vm321_vm2 = vcmp.ne.f32.partialorder %v320_v11, %v320_v11 }
  0xe3   :  { %v322_v5 = vsel %vm321_vm2, 0.0, %v320_v11 }
  0xe4   :  { %v323_v14 = vand.u32 2147483647, %v322_v5 }
  0xe6   :  { %v324_v15 = vmul.f32 0.5, %v323_v14 }
  0xe8   :  { %v326_v16 = vrot.slane %v324_v15, 1 }
  0xea   :  { %v328_v57 = vadd.f32 %v326_v16, %v143_v60 }
  0xec   :  { %330 = vst.msk [vmem:[#allocation14 - $0x7] sm:$0x80] %vm329_vm3, %v328_v57 }
  0xed   :  { %384 = shalt.err (!%p381_p12)
}
  0xee   :  { %s385_s23 = scalar_lea.hbm %s539_s1, 16 }
  0xef   :  { %p386_p13 = scmp.ne.s32.totalorder %s539_s1, %s385_s23  ;;  %p389_p0 = scmp.lt.u32.totalorder %s385_s23, %s539_s1 }
  0xf1   :  { %p391_p1 = pnand %p389_p0, %p386_p13 }
  0xf3   :  { %394 = shalt.err (!%p391_p1)
}
  0xf4   :  { %340 = dma.vmem_to_hbm [thread:$0]  %s338_s18, 16, %s539_s1, [#allocation13]  }
  0xf5   :  { %397 = dma.done.wait [#allocation13], 16  }
  0xf6   :  { %398 = vsyncadd [#allocation13], 4294967280 }
  0xf7   :  { %344 = vsyncpa [#allocation12], 1 }
  0xf8   :  { %345 = vsyncpa [#allocation13], 1 }

</bundles_post_ra>
